<compile_context>
chip_gen: v6e
topology: v6e:2x2x1
jax: 0.10.0
libtpu: 0.0.40
codegen_flags: <defaults>
</compile_context>

<pallas_src>
import jax
import jax.numpy as jnp
from jax.experimental import pallas as pl
from jax.experimental.pallas import tpu as pltpu


def _round_up(x, m):
    return ((x + m - 1) // m) * m


def _pad_to(x, shape):
    pads = [(0, s - d) for d, s in zip(x.shape, shape)]
    if any(p[1] for p in pads):
        x = jnp.pad(x, pads)
    return x


def _choose_tiles(T, M, K, N, itemsize):
    """Pick (task-batch, tm, tk, tn) and padded dims (Tp, Mp, Kp, Np)."""
    TM_MAX, TN_MAX, TK_MAX = 256, 256, 512  # ~3 MiB double-buffered f32; fits v7x

    tm = min(TM_MAX, _round_up(M, 8))
    tk = min(TK_MAX, _round_up(K, 128))
    tn = min(TN_MAX, _round_up(N, 128))

    Mp = _round_up(M, tm)
    Kp = _round_up(K, tk)
    Np = _round_up(N, tn)

    # Batch several tasks per grid step only when the whole per-task matmul
    # fits in a single tile (the "many tiny tasks" regime).
    tb = 1
    if Mp == tm and Kp == tk and Np == tn:
        per_task = (tm * tk + tk * tn + tm * tn) * itemsize + tm * tn * 4
        budget = 4 * 1024 * 1024  # per-step working set before double-buffering
        tb = max(1, min(T, budget // max(per_task, 1)))
        tb = min(tb, 16)
    Tp = _round_up(T, tb)
    return tb, tm, tk, tn, Tp, Mp, Kp, Np


def _multidense_kernel(x_ref, w_ref, b_ref, o_ref, acc_ref):
    # x_ref: (tb, tm, tk)   w_ref: (tb, tk, tn)   b_ref: (tb, 1, tn)
    # o_ref: (tb, tm, tn)   acc_ref: (tb, tm, tn) float32 scratch
    k = pl.program_id(3)

    @pl.when(k == 0)
    def _init():
        acc_ref[...] = jnp.zeros_like(acc_ref)

    acc_ref[...] += jnp.einsum(
        "tmk,tkn->tmn",
        x_ref[...],
        w_ref[...],
        preferred_element_type=jnp.float32,
    )

    @pl.when(k == pl.num_programs(3) - 1)
    def _finalize():
        out = acc_ref[...] + b_ref[...].astype(jnp.float32)
        o_ref[...] = out.astype(o_ref.dtype)


def multidense(inputs, w, b):
    """inputs: (T, M, K); w: (T, K, N); b: (T, N) -> stacked (T, M, N)."""
    inputs = jnp.asarray(inputs)
    w = jnp.asarray(w)
    b = jnp.asarray(b)

    T, M, K = inputs.shape
    _, _, N = w.shape
    itemsize = inputs.dtype.itemsize

    tb, tm, tk, tn, Tp, Mp, Kp, Np = _choose_tiles(T, M, K, N, itemsize)

    # Zero padding is exact: padded K columns are zero in both x and w, and
    # padded M/N rows/cols (and padded tasks) are sliced off below.
    xp = _pad_to(inputs, (Tp, Mp, Kp))
    wp = _pad_to(w, (Tp, Kp, Np))
    bp = _pad_to(b.reshape(T, 1, N), (Tp, 1, Np))

    grid = (Tp // tb, Mp // tm, Np // tn, Kp // tk)

    cost = pl.CostEstimate(
        flops=2 * T * M * K * N,
        transcendentals=0,
        bytes_accessed=itemsize * T * (M * K + K * N + M * N + N),
    )

    out = pl.pallas_call(
        _multidense_kernel,
        out_shape=jax.ShapeDtypeStruct((Tp, Mp, Np), inputs.dtype),
        grid_spec=pltpu.PrefetchScalarGridSpec(
            num_scalar_prefetch=0,
            grid=grid,
            in_specs=[
                pl.BlockSpec((tb, tm, tk), lambda t, i, j, k: (t, i, k)),
                pl.BlockSpec((tb, tk, tn), lambda t, i, j, k: (t, k, j)),
                pl.BlockSpec((tb, 1, tn), lambda t, i, j, k: (t, 0, j)),
            ],
            out_specs=pl.BlockSpec((tb, tm, tn), lambda t, i, j, k: (t, i, j)),
            scratch_shapes=[pltpu.VMEM((tb, tm, tn), jnp.float32)],
        ),
        compiler_params=pltpu.CompilerParams(
            dimension_semantics=("parallel", "parallel", "parallel", "arbitrary"),
            vmem_limit_bytes=32 * 1024 * 1024,
        ),
        cost_estimate=cost,
    )(xp, wp, bp)

    # Strip padding; return stacked result (list(out) reproduces PyTorch form).
    return out[:T, :M, :N]


if __name__ == "__main__":
    key = jax.random.PRNGKey(0)
    k1, k2 = jax.random.split(key)

    # Case 1: many tiny tasks (task-batched path; N padded 16 -> 128 lane-dense).
    T, M, K, N = 3, 8, 32, 16
    kx, kw, kb = jax.random.split(k1, 3)
    x1 = jax.random.normal(kx, (T, M, K), dtype=jnp.float32)
    w1 = jax.random.normal(kw, (T, K, N), dtype=jnp.float32) * 0.1
    b1 = jax.random.normal(kb, (T, N), dtype=jnp.float32) * 0.1

    out1 = jax.block_until_ready(multidense(x1, w1, b1))
    ref1 = jnp.stack([x1[i] @ w1[i] + b1[i] for i in range(T)])
    assert out1.shape == (T, M, N)
    assert jnp.allclose(out1, ref1, atol=1e-4, rtol=1e-4)

    # Case 2: larger K exercises the multi-step K accumulation (init/finalize).
    T2, M2, K2, N2 = 2, 16, 1088, 144
    kx2, kw2, kb2 = jax.random.split(k2, 3)
    x2 = jax.random.normal(kx2, (T2, M2, K2), dtype=jnp.float32) * 0.1
    w2 = jax.random.normal(kw2, (T2, K2, N2), dtype=jnp.float32) * 0.1
    b2 = jax.random.normal(kb2, (T2, N2), dtype=jnp.float32) * 0.1

    out2 = jax.block_until_ready(multidense(x2, w2, b2))
    ref2 = jnp.stack([x2[i] @ w2[i] + b2[i] for i in range(T2)])
    assert out2.shape == (T2, M2, N2)
    assert jnp.allclose(out2, ref2, atol=1e-3, rtol=1e-3)

    print("KERNEL_OK")
</pallas_src>

<mosaic_0001>
module attributes {stable_mosaic.version = 11 : i64} {
  func.func @_multidense_kernel(%arg0: i32, %arg1: i32, %arg2: i32, %arg3: i32, %arg4: memref<3x8x128xf32, #tpu.memory_space<vmem>>, %arg5: memref<3x128x128xf32, #tpu.memory_space<vmem>>, %arg6: memref<3x1x128xf32, #tpu.memory_space<vmem>>, %arg7: memref<3x8x128xf32, #tpu.memory_space<vmem>>, %arg8: memref<3x8x128xf32, #tpu.memory_space<vmem>>) attributes {dimension_semantics = [#tpu.dimension_semantics<parallel>, #tpu.dimension_semantics<parallel>, #tpu.dimension_semantics<parallel>, #tpu.dimension_semantics<arbitrary>], iteration_bounds = array<i64: 1, 1, 1, 1>, scalar_prefetch = 0 : i64, scratch_operands = 1 : i64, tpu.core_type = #tpu.core_type<tc>, window_params = [{transform_indices = @transform_0, window_bounds = array<i64: 3, 8, 128>}, {transform_indices = @transform_1, window_bounds = array<i64: 3, 128, 128>}, {transform_indices = @transform_2, window_bounds = array<i64: 3, 1, 128>}, {transform_indices = @transform_3, window_bounds = array<i64: 3, 8, 128>}]} {
    %c0_i32 = arith.constant 0 : i32
    %0 = arith.cmpi eq, %arg3, %c0_i32 : i32
    %1 = arith.extui %0 : i1 to i32
    %c0_i32_0 = arith.constant 0 : i32
    %2 = arith.cmpi ne, %1, %c0_i32_0 : i32
    scf.if %2 {
      %cst_14 = arith.constant 0.000000e+00 : f32
      %12 = vector.broadcast %cst_14 : f32 to vector<3x8x128xf32>
      %c0_15 = arith.constant 0 : index
      %c0_16 = arith.constant 0 : index
      %c0_17 = arith.constant 0 : index
      %13 = vector.load %arg8[%c0_15, %c0_16, %c0_17] : memref<3x8x128xf32, #tpu.memory_space<vmem>>, vector<3x8x128xf32>
      tpu.vector_store %arg8[%c0_15, %c0_16, %c0_17], %12 {strides = array<i32>} : memref<3x8x128xf32, #tpu.memory_space<vmem>>, vector<3x8x128xf32>,
    } else {
    }
    %c0 = arith.constant 0 : index
    %c0_1 = arith.constant 0 : index
    %c0_2 = arith.constant 0 : index
    %3 = vector.load %arg8[%c0, %c0_1, %c0_2] : memref<3x8x128xf32, #tpu.memory_space<vmem>>, vector<3x8x128xf32>
    %c0_3 = arith.constant 0 : index
    %c0_4 = arith.constant 0 : index
    %c0_5 = arith.constant 0 : index
    %4 = vector.load %arg4[%c0_3, %c0_4, %c0_5] : memref<3x8x128xf32, #tpu.memory_space<vmem>>, vector<3x8x128xf32>
    %c0_6 = arith.constant 0 : index
    %c0_7 = arith.constant 0 : index
    %c0_8 = arith.constant 0 : index
    %5 = vector.load %arg5[%c0_6, %c0_7, %c0_8] : memref<3x128x128xf32, #tpu.memory_space<vmem>>, vector<3x128x128xf32>
    "tpu.trace_start"() <{level = 10 : i32, message = "tmk,tkn->tmn"}> : () -> ()
    %cst = arith.constant dense<0.000000e+00> : vector<3x8x128xf32>
    %6 = tpu.matmul %4, %5, %cst {dimension_numbers = #tpu.dot_dimension_numbers<[2], [1], [1], [2], [0, 0, 0, 1, 1, 2], [0], [0]>} : vector<3x8x128xf32>, vector<3x128x128xf32>, vector<3x8x128xf32> -> vector<3x8x128xf32>
    "tpu.trace_stop"() : () -> ()
    %7 = arith.addf %3, %6 : vector<3x8x128xf32>
    %c0_9 = arith.constant 0 : index
    %c0_10 = arith.constant 0 : index
    %c0_11 = arith.constant 0 : index
    %8 = vector.load %arg8[%c0_9, %c0_10, %c0_11] : memref<3x8x128xf32, #tpu.memory_space<vmem>>, vector<3x8x128xf32>
    tpu.vector_store %arg8[%c0_9, %c0_10, %c0_11], %7 {strides = array<i32>} : memref<3x8x128xf32, #tpu.memory_space<vmem>>, vector<3x8x128xf32>,
    %c0_i32_12 = arith.constant 0 : i32
    %9 = arith.cmpi eq, %arg3, %c0_i32_12 : i32
    %10 = arith.extui %9 : i1 to i32
    %c0_i32_13 = arith.constant 0 : i32
    %11 = arith.cmpi ne, %10, %c0_i32_13 : i32
    scf.if %11 {
      %c0_14 = arith.constant 0 : index
      %c0_15 = arith.constant 0 : index
      %c0_16 = arith.constant 0 : index
      %12 = vector.load %arg8[%c0_14, %c0_15, %c0_16] : memref<3x8x128xf32, #tpu.memory_space<vmem>>, vector<3x8x128xf32>
      %c0_17 = arith.constant 0 : index
      %c0_18 = arith.constant 0 : index
      %c0_19 = arith.constant 0 : index
      %13 = vector.load %arg6[%c0_17, %c0_18, %c0_19] : memref<3x1x128xf32, #tpu.memory_space<vmem>>, vector<3x1x128xf32>
      %14 = vector.broadcast %13 : vector<3x1x128xf32> to vector<3x8x128xf32>
      %15 = arith.addf %12, %14 : vector<3x8x128xf32>
      %c0_20 = arith.constant 0 : index
      %c0_21 = arith.constant 0 : index
      %c0_22 = arith.constant 0 : index
      %16 = vector.load %arg7[%c0_20, %c0_21, %c0_22] : memref<3x8x128xf32, #tpu.memory_space<vmem>>, vector<3x8x128xf32>
      tpu.vector_store %arg7[%c0_20, %c0_21, %c0_22], %15 {strides = array<i32>} : memref<3x8x128xf32, #tpu.memory_space<vmem>>, vector<3x8x128xf32>,
    } else {
    }
    return
  }
  func.func @transform_0(%arg0: i32, %arg1: i32, %arg2: i32, %arg3: i32) -> (i32, i32, i32) {
    %c0_i32 = arith.constant 0 : i32
    return %arg0, %arg1, %arg3 : i32, i32, i32
  }
  func.func @transform_1(%arg0: i32, %arg1: i32, %arg2: i32, %arg3: i32) -> (i32, i32, i32) {
    %c0_i32 = arith.constant 0 : i32
    return %arg0, %arg3, %arg2 : i32, i32, i32
  }
  func.func @transform_2(%arg0: i32, %arg1: i32, %arg2: i32, %arg3: i32) -> (i32, i32, i32) {
    %c0_i32 = arith.constant 0 : i32
    %c0_i32_0 = arith.constant 0 : i32
    return %arg0, %c0_i32, %arg2 : i32, i32, i32
  }
  func.func @transform_3(%arg0: i32, %arg1: i32, %arg2: i32, %arg3: i32) -> (i32, i32, i32) {
    %c0_i32 = arith.constant 0 : i32
    return %arg0, %arg1, %arg2 : i32, i32, i32
  }
}

</mosaic_0001>

<bundles_post_ra>
// kernel: tpu_custom_call.1
= control target key start
LH: loop header
LB: loop body
LE: loop exit
PB: predicated region body
PF: predicated region fallthrough
CT: control target
= control target key end

     0   :  { %8 = vsyncpa [#allocation4], 0  ;;  %s711_s0 = inlined_call_operand.hbm [shape: f32[3,8,128], index: 0, kind: input, shape index: {}]   ;;  %s712_s1 = inlined_call_operand.hbm [shape: f32[3,128,128], index: 1, kind: input, shape index: {}]   ;;  %s713_s2 = inlined_call_operand.vmem [shape: f32[3,1,128], index: 2, kind: input, shape index: {}]   ;;  %s714_s3 = inlined_call_operand.hbm [shape: f32[3,8,128], index: 3, kind: output, shape index: {}]  }
   0x1   :  { %9 = vsyncpa [#allocation7], 0 }
   0x2   :  { %10 = vsyncpa [#allocation5], 0  ;;  %s603_s12 = smov [#allocation3]  }
   0x3   :  { %s16_s13 = sshll.u32 %s603_s12, 4  ;;  %s17_s13 = int_to_ptr.vmem [resolvable:$true] %s16_s13 }
   0x4   :  { %s545_s14 = scalar_lea.vmem %s17_s13, 384  ;;  %p550_p1 = scmp.lt.s32.totalorder %s17_s13, %s17_s13 }
   0x5   :  { %p546_p0 = scmp.ne.s32.totalorder %s17_s13, %s545_s14  ;;  %p551_p2 = scmp.lt.s32.totalorder %s545_s14, %s545_s14 }
   0x7   :  { %p552_p3 = por %p551_p2, %p550_p1 }
   0x9   :  { %p553_p4 = pnand %p552_p3, %p546_p0 }
   0xb   :  { %556 = shalt.err (!%p553_p4)
}
   0xc   :  { %s604_s15 = smov 128   ;;  %s605_s16 = smov 8  }
   0xd   :  { %22 = dma.hbm_to_vmem [thread:$0]  %s711_s0, 384, %s17_s13, [#allocation4], %s604_s15, %s604_s15, %s605_s16  }
   0xe   :  { %s606_s19 = smov [#allocation6]  }
   0xf   :  { %s28_s20 = sshll.u32 %s606_s19, 4  ;;  %s29_s20 = int_to_ptr.vmem [resolvable:$true] %s28_s20 }
  0x10   :  { %s565_s21 = scalar_lea.vmem %s29_s20, 6144  ;;  %p570_p6 = scmp.lt.s32.totalorder %s29_s20, %s29_s20 }
  0x11   :  { %p566_p5 = scmp.ne.s32.totalorder %s29_s20, %s565_s21  ;;  %p571_p7 = scmp.lt.s32.totalorder %s565_s21, %s565_s21 }
  0x13   :  { %p572_p8 = por %p571_p7, %p570_p6 }
  0x15   :  { %p573_p9 = pnand %p572_p8, %p566_p5 }
  0x17   :  { %576 = shalt.err (!%p573_p9)
}
  0x18   :  { %34 = dma.hbm_to_vmem [thread:$0]  %s712_s1, 6144, %s29_s20, [#allocation7], %s604_s15, %s604_s15, %s605_s16  }
  0x19   :  { %597 = dma.done.wait [#allocation4], 384  }
  0x1a   :  { %598 = vsyncadd [#allocation4], 4294966912 }
  0x1b   :  { %599 = dma.done.wait [#allocation7], 6144  }
  0x1c   :  { %600 = vsyncadd [#allocation7], 4294961152  ;;  %v607_v0 = vmov 0.0   ;;  %vm608_vm0 = vmmov 0   ;;  %v71_v1 = vld [vmem:[#allocation6 + $0x78] sm:$0xff]  ;;  %v70_v2 = vld [vmem:[#allocation6 + $0x70] sm:$0xff] }
  0x1d   :  { %425 = vmatprep.subr.mxu0 %v607_v0  ;;  %460 = vmatprep.subr.mxu1 %v607_v0  ;;  %v69_v3 = vld [vmem:[#allocation6 + $0x68] sm:$0xff]  ;;  %v68_v4 = vld [vmem:[#allocation6 + $0x60] sm:$0xff]  ;;  %v87_v5 = vld [vmem:[#allocation6 + $0xf8] sm:$0xff]  ;;  %s609_s28 = smov [#allocation8]  }
  0x1e   :  { %457 = vmatprep.mubr.msk.f32.mxu0 %vm608_vm0, %v607_v0  ;;  %492 = vmatprep.mubr.msk.f32.mxu1 %vm608_vm0, %v607_v0  ;;  %v67_v6 = vld [vmem:[#allocation6 + $0x58] sm:$0xff]  ;;  %v86_v7 = vld [vmem:[#allocation6 + $0xf0] sm:$0xff]  ;;  %v85_v8 = vld [vmem:[#allocation6 + $0xe8] sm:$0xff]  ;;  %s358_s29 = sshll.u32 %s609_s28, 4  ;;  %s359_s29 = int_to_ptr.vmem [resolvable:$true] %s358_s29 }
  0x1f   :  { %426 = vmatpush3.msra.mxu0 %v71_v1  ;;  %461 = vmatpush3.msra.mxu1 %v87_v5  ;;  %v66_v9 = vld [vmem:[#allocation6 + $0x50] sm:$0xff]  ;;  %v84_v10 = vld [vmem:[#allocation6 + $0xe0] sm:$0xff]  ;;  %v65_v11 = vld [vmem:[#allocation6 + $0x48] sm:$0xff]  ;;  %s577_s30 = scalar_lea.vmem %s359_s29, 384  ;;  %p582_p11 = scmp.lt.s32.totalorder %s359_s29, %s359_s29 }
  0x20   :  { %427 = vmatprep.subr.mxu0 %v607_v0  ;;  %462 = vmatprep.subr.mxu1 %v607_v0  ;;  %v83_v12 = vld [vmem:[#allocation6 + $0xd8] sm:$0xff]  ;;  %v64_v13 = vld [vmem:[#allocation6 + $0x40] sm:$0xff]  ;;  %v82_v14 = vld [vmem:[#allocation6 + $0xd0] sm:$0xff]  ;;  %p578_p10 = scmp.ne.s32.totalorder %s359_s29, %s577_s30  ;;  %p583_p12 = scmp.lt.s32.totalorder %s577_s30, %s577_s30 }
  0x21   :  { %428 = vmatpush3.msra.mxu0 %v70_v2  ;;  %463 = vmatpush3.msra.mxu1 %v86_v7  ;;  %v63_v15 = vld [vmem:[#allocation6 + $0x38] sm:$0xff]  ;;  %v81_v16 = vld [vmem:[#allocation6 + $0xc8] sm:$0xff]  ;;  %v62_v17 = vld [vmem:[#allocation6 + $0x30] sm:$0xff] }
  0x22   :  { %429 = vmatprep.subr.mxu0 %v607_v0  ;;  %464 = vmatprep.subr.mxu1 %v607_v0  ;;  %v80_v18 = vld [vmem:[#allocation6 + $0xc0] sm:$0xff]  ;;  %v61_v19 = vld [vmem:[#allocation6 + $0x28] sm:$0xff]  ;;  %v79_v20 = vld [vmem:[#allocation6 + $0xb8] sm:$0xff]  ;;  %p584_p13 = por %p583_p12, %p582_p11 }
  0x23   :  { %430 = vmatpush3.msra.mxu0 %v69_v3  ;;  %465 = vmatpush3.msra.mxu1 %v85_v8  ;;  %v60_v21 = vld [vmem:[#allocation6 + $0x20] sm:$0xff]  ;;  %v78_v22 = vld [vmem:[#allocation6 + $0xb0] sm:$0xff]  ;;  %v59_v23 = vld [vmem:[#allocation6 + $0x18] sm:$0xff] }
  0x24   :  { %431 = vmatprep.subr.mxu0 %v607_v0  ;;  %466 = vmatprep.subr.mxu1 %v607_v0  ;;  %v77_v24 = vld [vmem:[#allocation6 + $0xa8] sm:$0xff]  ;;  %v58_v25 = vld [vmem:[#allocation6 + $0x10] sm:$0xff]  ;;  %v76_v26 = vld [vmem:[#allocation6 + $0xa0] sm:$0xff]  ;;  %p585_p0 = pnand %p584_p13, %p578_p10 }
  0x25   :  { %432 = vmatpush3.msra.mxu0 %v68_v4  ;;  %467 = vmatpush3.msra.mxu1 %v84_v10  ;;  %v57_v27 = vld [vmem:[#allocation6 + $0x8] sm:$0xff]  ;;  %v75_v28 = vld [vmem:[#allocation6 + $0x98] sm:$0xff]  ;;  %v56_v29 = vld [vmem:[#allocation6] sm:$0xff] }
  0x26   :  { %433 = vmatprep.subr.mxu0 %v607_v0  ;;  %468 = vmatprep.subr.mxu1 %v607_v0  ;;  %v53_v30 = vld [vmem:[#allocation3] sm:$0xff]  ;;  %v103_v31 = vld [vmem:[#allocation6 + $0x178] sm:$0xff]  ;;  %v74_v32 = vld [vmem:[#allocation6 + $0x90] sm:$0xff] }
  0x27   :  { %434 = vmatpush3.msra.mxu0 %v67_v6  ;;  %469 = vmatpush3.msra.mxu1 %v83_v12  ;;  %v102_v33 = vld [vmem:[#allocation6 + $0x170] sm:$0xff]  ;;  %v73_v34 = vld [vmem:[#allocation6 + $0x88] sm:$0xff]  ;;  %v72_v36 = vld [vmem:[#allocation6 + $0x80] sm:$0xff] }
  0x28   :  { %435 = vmatprep.subr.mxu0 %v607_v0  ;;  %470 = vmatprep.subr.mxu1 %v607_v0  ;;  %v101_v35 = vld [vmem:[#allocation6 + $0x168] sm:$0xff]  ;;  %v54_v37 = vld [vmem:[#allocation3 + $0x8] sm:$0xff]  ;;  %v100_v38 = vld [vmem:[#allocation6 + $0x160] sm:$0xff] }
  0x29   :  { %436 = vmatpush3.msra.mxu0 %v66_v9  ;;  %471 = vmatpush3.msra.mxu1 %v82_v14  ;;  %v99_v39 = vld [vmem:[#allocation6 + $0x158] sm:$0xff]  ;;  %v98_v40 = vld [vmem:[#allocation6 + $0x150] sm:$0xff]  ;;  %v97_v41 = vld [vmem:[#allocation6 + $0x148] sm:$0xff] }
  0x2a   :  { %437 = vmatprep.subr.mxu0 %v607_v0  ;;  %472 = vmatprep.subr.mxu1 %v607_v0  ;;  %v96_v42 = vld [vmem:[#allocation6 + $0x140] sm:$0xff]  ;;  %v95_v43 = vld [vmem:[#allocation6 + $0x138] sm:$0xff]  ;;  %v94_v44 = vld [vmem:[#allocation6 + $0x130] sm:$0xff] }
  0x2b   :  { %438 = vmatpush3.msra.mxu0 %v65_v11  ;;  %473 = vmatpush3.msra.mxu1 %v81_v16  ;;  %v93_v45 = vld [vmem:[#allocation6 + $0x128] sm:$0xff]  ;;  %v92_v46 = vld [vmem:[#allocation6 + $0x120] sm:$0xff]  ;;  %v91_v47 = vld [vmem:[#allocation6 + $0x118] sm:$0xff] }
  0x2c   :  { %439 = vmatprep.subr.mxu0 %v607_v0  ;;  %474 = vmatprep.subr.mxu1 %v607_v0  ;;  %v90_v48 = vld [vmem:[#allocation6 + $0x110] sm:$0xff]  ;;  %v89_v49 = vld [vmem:[#allocation6 + $0x108] sm:$0xff]  ;;  %v88_v50 = vld [vmem:[#allocation6 + $0x100] sm:$0xff] }
  0x2d   :  { %440 = vmatpush3.msra.mxu0 %v64_v13  ;;  %475 = vmatpush3.msra.mxu1 %v80_v18  ;;  %v55_v51 = vld [vmem:[#allocation3 + $0x10] sm:$0xff]  ;;  %v371_v52 = vld [vmem:[%s713_s2] ss:$0 sm:$0xff]  ;;  %v372_v56 = vld [vmem:[%s713_s2 + $0x1] ss:$0 sm:$0xff] }
  0x2e   :  { %441 = vmatprep.subr.mxu0 %v607_v0  ;;  %476 = vmatprep.subr.mxu1 %v607_v0  ;;  %v373_v60 = vld [vmem:[%s713_s2 + $0x2] ss:$0 sm:$0xff] }
  0x2f   :  { %442 = vmatpush3.msra.mxu0 %v63_v15  ;;  %477 = vmatpush3.msra.mxu1 %v79_v20 }
  0x30   :  { %443 = vmatprep.subr.mxu0 %v607_v0  ;;  %478 = vmatprep.subr.mxu1 %v607_v0 }
  0x31   :  { %444 = vmatpush3.msra.mxu0 %v62_v17  ;;  %479 = vmatpush3.msra.mxu1 %v78_v22 }
  0x32   :  { %445 = vmatprep.subr.mxu0 %v607_v0  ;;  %480 = vmatprep.subr.mxu1 %v607_v0 }
  0x33   :  { %446 = vmatpush3.msra.mxu0 %v61_v19  ;;  %481 = vmatpush3.msra.mxu1 %v77_v24 }
  0x34   :  { %447 = vmatprep.subr.mxu0 %v607_v0  ;;  %482 = vmatprep.subr.mxu1 %v607_v0 }
  0x35   :  { %448 = vmatpush3.msra.mxu0 %v60_v21  ;;  %483 = vmatpush3.msra.mxu1 %v76_v26 }
  0x36   :  { %449 = vmatprep.subr.mxu0 %v607_v0  ;;  %484 = vmatprep.subr.mxu1 %v607_v0 }
  0x37   :  { %450 = vmatpush3.msra.mxu0 %v59_v23  ;;  %485 = vmatpush3.msra.mxu1 %v75_v28 }
  0x38   :  { %451 = vmatprep.subr.mxu0 %v607_v0  ;;  %486 = vmatprep.subr.mxu1 %v607_v0 }
  0x39   :  { %452 = vmatpush3.msra.mxu0 %v58_v25  ;;  %487 = vmatpush3.msra.mxu1 %v74_v32 }
  0x3a   :  { %453 = vmatprep.subr.mxu0 %v607_v0  ;;  %488 = vmatprep.subr.mxu1 %v607_v0 }
  0x3b   :  { %454 = vmatpush3.msra.mxu0 %v57_v27  ;;  %489 = vmatpush3.msra.mxu1 %v73_v34 }
  0x3c   :  { %455 = vmatprep.subr.mxu0 %v607_v0  ;;  %490 = vmatprep.subr.mxu1 %v607_v0 }
  0x3d   :  { %456 = vmatpush3.msra.mxu0 %v56_v29  ;;  %491 = vmatpush3.msra.mxu1 %v72_v36 }
  0x3e   :  { %458 = vmatmul.mubr.f32.vlgmr.msra.gmra.mxu0 %v53_v30  ;;  %495 = vmatprep.subr.mxu0 %v607_v0 }
  0x3f   :  { %496 = vmatpush3.msra.mxu0 %v103_v31  ;;  %493 = vmatmul.mubr.f32.vlgmr.msra.gmra.mxu1 %v54_v37 }
  0x40   :  { %497 = vmatprep.subr.mxu0 %v607_v0  ;;  %527 = vmatprep.mubr.msk.f32.mxu0 %vm608_vm0, %v607_v0 }
  0x41   :  { %498 = vmatpush3.msra.mxu0 %v102_v33 }
  0x42   :  { %499 = vmatprep.subr.mxu0 %v607_v0 }
  0x43   :  { %500 = vmatpush3.msra.mxu0 %v101_v35 }
  0x44   :  { %501 = vmatprep.subr.mxu0 %v607_v0 }
  0x45   :  { %502 = vmatpush3.msra.mxu0 %v100_v38 }
  0x46   :  { %503 = vmatprep.subr.mxu0 %v607_v0 }
  0x47   :  { %504 = vmatpush3.msra.mxu0 %v99_v39 }
  0x48   :  { %505 = vmatprep.subr.mxu0 %v607_v0 }
  0x49   :  { %506 = vmatpush3.msra.mxu0 %v98_v40 }
  0x4a   :  { %507 = vmatprep.subr.mxu0 %v607_v0 }
  0x4b   :  { %508 = vmatpush3.msra.mxu0 %v97_v41 }
  0x4c   :  { %509 = vmatprep.subr.mxu0 %v607_v0 }
  0x4d   :  { %510 = vmatpush3.msra.mxu0 %v96_v42 }
  0x4e   :  { %511 = vmatprep.subr.mxu0 %v607_v0 }
  0x4f   :  { %512 = vmatpush3.msra.mxu0 %v95_v43 }
  0x50   :  { %513 = vmatprep.subr.mxu0 %v607_v0 }
  0x51   :  { %514 = vmatpush3.msra.mxu0 %v94_v44 }
  0x52   :  { %515 = vmatprep.subr.mxu0 %v607_v0 }
  0x53   :  { %516 = vmatpush3.msra.mxu0 %v93_v45 }
  0x54   :  { %517 = vmatprep.subr.mxu0 %v607_v0 }
  0x55   :  { %518 = vmatpush3.msra.mxu0 %v92_v46 }
  0x56   :  { %519 = vmatprep.subr.mxu0 %v607_v0 }
  0x57   :  { %520 = vmatpush3.msra.mxu0 %v91_v47 }
  0x58   :  { %521 = vmatprep.subr.mxu0 %v607_v0 }
  0x59   :  { %522 = vmatpush3.msra.mxu0 %v90_v48 }
  0x5a   :  { %523 = vmatprep.subr.mxu0 %v607_v0 }
  0x5b   :  { %524 = vmatpush3.msra.mxu0 %v89_v49 }
  0x5c   :  { %525 = vmatprep.subr.mxu0 %v607_v0 }
  0x5d   :  { %526 = vmatpush3.msra.mxu0 %v88_v50 }
  0x5e   :  { %528 = vmatmul.mubr.f32.vlgmr.msra.gmra.mxu0 %v55_v51 }
  0xfe   :  { %v170_v53 = vpop.f32.mrf.mxu0 }
  0xff   :  { %v347_v54 = vadd.f32 %v371_v52, %v170_v53  ;;  %v240_v57 = vpop.f32.mrf.mxu1 }
 0x100   :  { %v459_v55 = vpop.f32.mrf.mxu0  ;;  %v348_v58 = vadd.f32 %v372_v56, %v240_v57 }
 0x101   :  { %350 = vst [vmem:[#allocation8] sm:$0xff] %v347_v54  ;;  %v494_v59 = vpop.f32.mrf.mxu1 }
 0x102   :  { %351 = vst [vmem:[#allocation8 + $0x8] sm:$0xff] %v348_v58 }
 0x11e   :  { %v310_v61 = vpop.f32.mrf.mxu0 }
 0x11f   :  { %v349_v62 = vadd.f32 %v373_v60, %v310_v61 }
 0x120   :  { %v529_v63 = vpop.f32.mrf.mxu0 }
 0x121   :  { %352 = vst [vmem:[#allocation8 + $0x10] sm:$0xff] %v349_v62 }
 0x122   :  { %588 = shalt.err (!%p585_p0)
}
 0x123   :  { %364 = dma.vmem_to_hbm [thread:$0]  %s359_s29, 384, %s714_s3, [#allocation5], %s604_s15, %s604_s15, %s605_s16  }
 0x124   :  { %601 = dma.done.wait [#allocation5], 384  }
 0x125   :  { %602 = vsyncadd [#allocation5], 4294966912 }
 0x126   :  { %368 = vsyncpa [#allocation4], 1 }
 0x127   :  { %369 = vsyncpa [#allocation7], 1 }
 0x128   :  { %370 = vsyncpa [#allocation5], 1 }

</bundles_post_ra>
